<compile_context>
chip_gen: v5e
topology: v5e:2x2
jax: 0.10.0
libtpu: 0.0.40
codegen_flags: <defaults>
</compile_context>

<pallas_src>
from functools import partial

import jax
import jax.numpy as jnp
from jax.experimental import pallas as pl
from jax.experimental.pallas import tpu as pltpu


def _round_up(x, m):
    return ((x + m - 1) // m) * m


# -----------------------------------------------------------------------------
# One-time parameter packing (hoists all transposes / casts out of the fwd path)
# -----------------------------------------------------------------------------
def pack_dqn_params(params, compute_dtype=jnp.bfloat16):
    """Pack PyTorch-convention params into lane-dense slabs.

    Weight slab (compute_dtype), lane width L = round_up(max(fc1, fc2, na), 128):
        rows [r_w1 : r_w1+in_dim), all L lanes : fc1.weight^T  (cols >= fc1 are 0)
        rows [r_w2 : r_w2+L),      all L lanes : fc2.weight^T  (rows >= fc1 / cols >= fc2 are 0)
        rows [r_w3 : r_w3+L),      all L lanes : fc3.weight^T  (rows >= fc2 / cols >= na  are 0)
    Bias slab (float32, shape (8, L)): row 0 = fc1.bias, row 1 = fc2.bias,
    row 2 = fc3.bias (padded lanes are exactly 0, so padded Q lanes stay 0).

    Returns (w_slab, b_slab, dims) where dims holds static Python ints.
    """
    w1, b1 = params["w1"], params["b1"]   # (fc1, in), (fc1,)
    w2, b2 = params["w2"], params["b2"]   # (fc2, fc1), (fc2,)
    w3, b3 = params["w3"], params["b3"]   # (na, fc2),  (na,)

    fc1, in_dim = w1.shape
    fc2, _ = w2.shape
    n_actions, _ = w3.shape

    lanes = _round_up(max(fc1, fc2, n_actions), 128)

    r_w1 = 0
    r_w2 = _round_up(in_dim, 8)
    r_w3 = r_w2 + lanes
    rows = r_w3 + lanes

    w_slab = jnp.zeros((rows, lanes), compute_dtype)
    w_slab = w_slab.at[r_w1:r_w1 + in_dim, :fc1].set(w1.T.astype(compute_dtype))
    w_slab = w_slab.at[r_w2:r_w2 + fc1, :fc2].set(w2.T.astype(compute_dtype))
    w_slab = w_slab.at[r_w3:r_w3 + fc2, :n_actions].set(w3.T.astype(compute_dtype))

    b_slab = jnp.zeros((8, lanes), jnp.float32)
    b_slab = b_slab.at[0, :fc1].set(b1.astype(jnp.float32))
    b_slab = b_slab.at[1, :fc2].set(b2.astype(jnp.float32))
    b_slab = b_slab.at[2, :n_actions].set(b3.astype(jnp.float32))

    dims = dict(in_dim=int(in_dim), fc1=int(fc1), fc2=int(fc2),
                n_actions=int(n_actions), lanes=int(lanes),
                r_w1=int(r_w1), r_w2=int(r_w2), r_w3=int(r_w3))
    return w_slab, b_slab, dims


# -----------------------------------------------------------------------------
# Kernel: fused fc1->ReLU->fc2->ReLU->fc3 on one lane-dense batch tile
# -----------------------------------------------------------------------------
def _dqn_kernel(x_ref, w_ref, b_ref, out_ref, *, dims):
    in_dim = dims["in_dim"]
    lanes = dims["lanes"]
    r_w1, r_w2, r_w3 = dims["r_w1"], dims["r_w2"], dims["r_w3"]
    cdt = w_ref.dtype                      # compute dtype (weights pre-cast at pack time)

    x = x_ref[...].astype(cdt)             # (tb, in_dim)

    # fc1 + ReLU : (tb, in_dim) @ (in_dim, lanes) -> lane-dense (tb, lanes) f32 acc.
    h = jnp.dot(x, w_ref[r_w1:r_w1 + in_dim, :], preferred_element_type=jnp.float32)
    h = jnp.maximum(h + b_ref[0:1, :], 0.0)

    # fc2 + ReLU : zero-padded K rows / lanes contribute nothing.
    h = jnp.dot(h.astype(cdt), w_ref[r_w2:r_w2 + lanes, :],
                preferred_element_type=jnp.float32)
    h = jnp.maximum(h + b_ref[1:2, :], 0.0)

    # fc3 (raw Q-values). Padded action lanes stay exactly 0 (zero weights + zero bias).
    q = jnp.dot(h.astype(cdt), w_ref[r_w3:r_w3 + lanes, :],
                preferred_element_type=jnp.float32)
    out_ref[...] = (q + b_ref[2:3, :]).astype(out_ref.dtype)   # unmasked lane-dense store


# -----------------------------------------------------------------------------
# Wrapper
# -----------------------------------------------------------------------------
def dqn_forward(state, w_slab, b_slab, dims, *, batch_tile=4096):
    """DQN forward pass on TPU.

    state:  (B, input_dim) float32
    w_slab, b_slab, dims: output of pack_dqn_params (packed once, reused every call)
    returns (B, n_actions) float32 Q-values (same semantics as the PyTorch module)
    """
    B, in_dim = state.shape
    assert in_dim == dims["in_dim"]
    lanes = dims["lanes"]
    n_actions = dims["n_actions"]

    # Tile selection:
    #  - small B: one step (latency bound; extra steps are pure overhead on v5e/v6e)
    #  - B >= 512: at least 2 steps so the "parallel" batch axis shards across both
    #    TensorCores on v7x; tiles capped at batch_tile rows.
    if B < 512:
        tb = B
    else:
        n_tiles = max(2, pl.cdiv(B, batch_tile))
        tb = min(B, _round_up(pl.cdiv(B, n_tiles), 8))
    grid = (pl.cdiv(B, tb),)

    flops = 2 * B * (in_dim * dims["fc1"]
                     + dims["fc1"] * dims["fc2"]
                     + dims["fc2"] * n_actions)
    bytes_accessed = (state.size * state.dtype.itemsize
                      + w_slab.size * w_slab.dtype.itemsize
                      + b_slab.size * 4
                      + B * lanes * 4)
    cost = pl.CostEstimate(flops=flops, transcendentals=0,
                           bytes_accessed=bytes_accessed)

    kernel = partial(_dqn_kernel, dims=dims)

    q_padded = pl.pallas_call(
        kernel,
        out_shape=jax.ShapeDtypeStruct((B, lanes), jnp.float32),
        grid_spec=pltpu.PrefetchScalarGridSpec(
            num_scalar_prefetch=0,
            grid=grid,
            in_specs=[
                pl.BlockSpec((tb, in_dim), lambda i: (i, 0)),    # batch tile
                pl.BlockSpec(w_slab.shape, lambda i: (0, 0)),    # weights: VMEM-resident
                pl.BlockSpec(b_slab.shape, lambda i: (0, 0)),    # f32 biases
            ],
            out_specs=pl.BlockSpec((tb, lanes), lambda i: (i, 0)),
        ),
        compiler_params=pltpu.CompilerParams(
            dimension_semantics=("parallel",)),                  # megacore on v7x
        cost_estimate=cost,
    )(state, w_slab, b_slab)

    # Lane-padded Q slab -> true action width (padded lanes are exactly zero).
    return q_padded[:, :n_actions]


# -----------------------------------------------------------------------------
# Init + pure-JAX reference (PyTorch nn.Linear conventions)
# -----------------------------------------------------------------------------
def init_dqn_params(key, input_dim, fc1_dims, fc2_dims, n_actions):
    """Deterministic init mimicking nn.Linear's U(-1/sqrt(fan_in), 1/sqrt(fan_in))."""
    keys = jax.random.split(key, 6)

    def linear_init(kw, kb, fan_in, fan_out):
        bound = 1.0 / jnp.sqrt(jnp.float32(fan_in))
        w = jax.random.uniform(kw, (fan_out, fan_in), jnp.float32, -bound, bound)
        b = jax.random.uniform(kb, (fan_out,), jnp.float32, -bound, bound)
        return w, b

    w1, b1 = linear_init(keys[0], keys[1], input_dim, fc1_dims)
    w2, b2 = linear_init(keys[2], keys[3], fc1_dims, fc2_dims)
    w3, b3 = linear_init(keys[4], keys[5], fc2_dims, n_actions)
    return {"w1": w1, "b1": b1, "w2": w2, "b2": b2, "w3": w3, "b3": b3}


def dqn_forward_ref(state, params):
    """Pure-JAX reference for correctness check."""
    h1 = jax.nn.relu(state @ params["w1"].T + params["b1"])
    h2 = jax.nn.relu(h1 @ params["w2"].T + params["b2"])
    return h2 @ params["w3"].T + params["b3"]


if __name__ == "__main__":
    # Shapes consistent with DeepQNetwork(lr, input_dims=(16,), fc1_dims=64,
    # fc2_dims=64, n_actions=8); batch of 8 observation vectors.
    # TODO(synk): Adam optimizer / MSELoss / .to(device) are training-side and not
    # part of the forward pass; they are intentionally not translated.
    B, INPUT_DIM, FC1, FC2, N_ACTIONS = 8, 16, 64, 64, 8

    key = jax.random.PRNGKey(0)
    pkey, xkey, xkey2 = jax.random.split(key, 3)

    params = init_dqn_params(pkey, INPUT_DIM, FC1, FC2, N_ACTIONS)
    state = jax.random.normal(xkey, (B, INPUT_DIM), dtype=jnp.float32)
    expected = dqn_forward_ref(state, params)

    # Default path: bf16 matmul operands, f32 accumulation / bias / ReLU.
    w_bf16, b_f32, dims = pack_dqn_params(params, compute_dtype=jnp.bfloat16)
    actions = jax.block_until_ready(dqn_forward(state, w_bf16, b_f32, dims))
    assert actions.shape == (B, N_ACTIONS)
    assert jnp.allclose(actions, expected, atol=5e-2, rtol=5e-2)

    # f32-packed slab: bit-accurate check of the fused kernel structure.
    w_f32, b_f32b, dims_f32 = pack_dqn_params(params, compute_dtype=jnp.float32)
    actions_f32 = jax.block_until_ready(dqn_forward(state, w_f32, b_f32b, dims_f32))
    assert jnp.allclose(actions_f32, expected, atol=1e-5, rtol=1e-5)

    # Multi-tile + ragged batch path (2 grid steps, partial last block).
    B_big = 600
    state_big = jax.random.normal(xkey2, (B_big, INPUT_DIM), dtype=jnp.float32)
    q_big = jax.block_until_ready(dqn_forward(state_big, w_f32, b_f32b, dims_f32))
    q_big_ref = dqn_forward_ref(state_big, params)
    assert q_big.shape == (B_big, N_ACTIONS)
    assert jnp.allclose(q_big, q_big_ref, atol=1e-5, rtol=1e-5)

    print("KERNEL_OK")
</pallas_src>

<mosaic_0001>
module attributes {stable_mosaic.version = 11 : i64} {
  func.func @_dqn_kernel(%arg0: i32, %arg1: memref<8x16xf32, #tpu.memory_space<vmem>>, %arg2: memref<272x128xbf16, #tpu.memory_space<vmem>>, %arg3: memref<8x128xf32, #tpu.memory_space<vmem>>, %arg4: memref<8x128xf32, #tpu.memory_space<vmem>>) attributes {dimension_semantics = [#tpu.dimension_semantics<parallel>], iteration_bounds = array<i64: 1>, scalar_prefetch = 0 : i64, scratch_operands = 0 : i64, tpu.core_type = #tpu.core_type<tc>, window_params = [{transform_indices = @transform_0, window_bounds = array<i64: 8, 16>}, {pipeline_mode = #tpu.pipeline_mode<synchronous>, transform_indices = @transform_1, window_bounds = array<i64: 272, 128>}, {pipeline_mode = #tpu.pipeline_mode<synchronous>, transform_indices = @transform_2, window_bounds = array<i64: 8, 128>}, {transform_indices = @transform_3, window_bounds = array<i64: 8, 128>}]} {
    %c0 = arith.constant 0 : index
    %c0_0 = arith.constant 0 : index
    %0 = vector.load %arg1[%c0, %c0_0] : memref<8x16xf32, #tpu.memory_space<vmem>>, vector<8x16xf32>
    %1 = arith.truncf %0 : vector<8x16xf32> to vector<8x16xbf16>
    %c0_1 = arith.constant 0 : index
    %c0_2 = arith.constant 0 : index
    %2 = vector.load %arg2[%c0_1, %c0_2] : memref<272x128xbf16, #tpu.memory_space<vmem>>, vector<16x128xbf16>
    %cst = arith.constant dense<0.000000e+00> : vector<8x128xf32>
    %3 = tpu.matmul %1, %2, %cst {dimension_numbers = #tpu.dot_dimension_numbers<[1], [0], [0], [1], [0, 0, 1, 1], [], []>} : vector<8x16xbf16>, vector<16x128xbf16>, vector<8x128xf32> -> vector<8x128xf32>
    %c0_3 = arith.constant 0 : index
    %c0_4 = arith.constant 0 : index
    %4 = vector.load %arg3[%c0_3, %c0_4] : memref<8x128xf32, #tpu.memory_space<vmem>>, vector<1x128xf32>
    %5 = vector.broadcast %4 : vector<1x128xf32> to vector<8x128xf32>
    %6 = arith.addf %3, %5 : vector<8x128xf32>
    %cst_5 = arith.constant 0.000000e+00 : f32
    %7 = vector.broadcast %cst_5 : f32 to vector<8x128xf32>
    %8 = arith.maximumf %6, %7 : vector<8x128xf32>
    %9 = arith.truncf %8 : vector<8x128xf32> to vector<8x128xbf16>
    %c16 = arith.constant 16 : index
    %c0_6 = arith.constant 0 : index
    %10 = vector.load %arg2[%c16, %c0_6] : memref<272x128xbf16, #tpu.memory_space<vmem>>, vector<128x128xbf16>
    %cst_7 = arith.constant dense<0.000000e+00> : vector<8x128xf32>
    %11 = tpu.matmul %9, %10, %cst_7 {dimension_numbers = #tpu.dot_dimension_numbers<[1], [0], [0], [1], [0, 0, 1, 1], [], []>} : vector<8x128xbf16>, vector<128x128xbf16>, vector<8x128xf32> -> vector<8x128xf32>
    %c1 = arith.constant 1 : index
    %c0_8 = arith.constant 0 : index
    %12 = vector.load %arg3[%c1, %c0_8] : memref<8x128xf32, #tpu.memory_space<vmem>>, vector<1x128xf32>
    %13 = vector.broadcast %12 : vector<1x128xf32> to vector<8x128xf32>
    %14 = arith.addf %11, %13 : vector<8x128xf32>
    %cst_9 = arith.constant 0.000000e+00 : f32
    %15 = vector.broadcast %cst_9 : f32 to vector<8x128xf32>
    %16 = arith.maximumf %14, %15 : vector<8x128xf32>
    %17 = arith.truncf %16 : vector<8x128xf32> to vector<8x128xbf16>
    %c144 = arith.constant 144 : index
    %c0_10 = arith.constant 0 : index
    %18 = vector.load %arg2[%c144, %c0_10] : memref<272x128xbf16, #tpu.memory_space<vmem>>, vector<128x128xbf16>
    %cst_11 = arith.constant dense<0.000000e+00> : vector<8x128xf32>
    %19 = tpu.matmul %17, %18, %cst_11 {dimension_numbers = #tpu.dot_dimension_numbers<[1], [0], [0], [1], [0, 0, 1, 1], [], []>} : vector<8x128xbf16>, vector<128x128xbf16>, vector<8x128xf32> -> vector<8x128xf32>
    %c2 = arith.constant 2 : index
    %c0_12 = arith.constant 0 : index
    %20 = vector.load %arg3[%c2, %c0_12] : memref<8x128xf32, #tpu.memory_space<vmem>>, vector<1x128xf32>
    %21 = vector.broadcast %20 : vector<1x128xf32> to vector<8x128xf32>
    %22 = arith.addf %19, %21 : vector<8x128xf32>
    %c0_13 = arith.constant 0 : index
    %c0_14 = arith.constant 0 : index
    %23 = vector.load %arg4[%c0_13, %c0_14] : memref<8x128xf32, #tpu.memory_space<vmem>>, vector<8x128xf32>
    tpu.vector_store %arg4[%c0_13, %c0_14], %22 {strides = array<i32>} : memref<8x128xf32, #tpu.memory_space<vmem>>, vector<8x128xf32>,
    return
  }
  func.func @transform_0(%arg0: i32) -> (i32, i32) {
    %c0_i32 = arith.constant 0 : i32
    %c0_i32_0 = arith.constant 0 : i32
    return %arg0, %c0_i32 : i32, i32
  }
  func.func @transform_1(%arg0: i32) -> (i32, i32) {
    %c0_i32 = arith.constant 0 : i32
    %c0_i32_0 = arith.constant 0 : i32
    %c0_i32_1 = arith.constant 0 : i32
    return %c0_i32, %c0_i32_0 : i32, i32
  }
  func.func @transform_2(%arg0: i32) -> (i32, i32) {
    %c0_i32 = arith.constant 0 : i32
    %c0_i32_0 = arith.constant 0 : i32
    %c0_i32_1 = arith.constant 0 : i32
    return %c0_i32, %c0_i32_0 : i32, i32
  }
  func.func @transform_3(%arg0: i32) -> (i32, i32) {
    %c0_i32 = arith.constant 0 : i32
    %c0_i32_0 = arith.constant 0 : i32
    return %arg0, %c0_i32 : i32, i32
  }
}

</mosaic_0001>

<bundles_post_ra>
// kernel: tpu_custom_call.1
= control target key start
LH: loop header
LB: loop body
LE: loop exit
PB: predicated region body
PF: predicated region fallthrough
CT: control target
= control target key end

     0   :  { %8 = vsyncpa [#allocation3], 0  ;;  %s504_s0 = inlined_call_operand.hbm [shape: f32[8,16], index: 0, kind: input, shape index: {}]   ;;  %s505_s1 = inlined_call_operand.hbm [shape: bf16[272,128], index: 1, kind: input, shape index: {}]   ;;  %s506_s2 = inlined_call_operand.hbm [shape: f32[8,128], index: 2, kind: input, shape index: {}]   ;;  %s507_s3 = inlined_call_operand.hbm [shape: f32[8,128], index: 3, kind: output, shape index: {}]  }
   0x1   :  { %9 = vsyncpa [#allocation6], 0  ;;  %s26_s14 = sshll.u32 %s505_s1, 4  ;;  %s27_s14 = int_to_ptr.hbm [resolvable:$true] %s26_s14 }
   0x2   :  { %10 = vsyncpa [#allocation4], 0  ;;  %s466_s15 = smov [#allocation5]   ;;  %s16_s19 = sshll.u32 %s504_s0, 4  ;;  %s17_s19 = int_to_ptr.hbm [resolvable:$true] %s16_s19 }
   0x3   :  { %s28_s16 = sshll.u32 %s466_s15, 4  ;;  %s467_s20 = smov 64   ;;  %s29_s16 = int_to_ptr.vmem [resolvable:$true] %s28_s16 }
   0x4   :  { %s468_s21 = smov 4   ;;  %s469_s22 = smov [#allocation2]  }
   0x5   :  { %34 = dma.hbm_to_vmem [thread:$0]  %s27_s14, 2176, %s29_s16, [#allocation6], %s467_s20, %s467_s20, %s468_s21  }
   0x6   :  { %s18_s23 = sshll.u32 %s469_s22, 4  ;;  %s40_s26 = sshll.u32 %s506_s2, 4  ;;  %s19_s23 = int_to_ptr.vmem [resolvable:$true] %s18_s23  ;;  %s41_s26 = int_to_ptr.hbm [resolvable:$true] %s40_s26 }
   0x7   :  { %21 = dma.hbm_to_vmem [thread:$0]  %s17_s19, 128, %s19_s23, [#allocation3]  }
   0x8   :  { %s470_s1 = smov [#allocation7]  }
   0x9   :  { %s42_s27 = sshll.u32 %s470_s1, 4  ;;  %s43_s27 = int_to_ptr.vmem [resolvable:$true] %s42_s27 }
   0xa   :  { %45 = dma.hbm_to_vmem [thread:$0]  %s41_s26, 128, %s43_s27, [#allocation6]  }
   0xb   :  { %460 = dma.done.wait [#allocation3], 128  }
   0xc   :  { %461 = vsyncadd [#allocation3], 4294967168 }
   0xd   :  { %462 = dma.done.wait [#allocation6], 2304  }
   0xe   :  { %463 = vsyncadd [#allocation6], 4294964992  ;;  %v338_v0 = vld [vmem:[#allocation5] sm:$0xff]  ;;  %v59_v1 = vld [vmem:[#allocation2] sm:$0xff]  ;;  %vm71_vm0 = vcmask 130048   ;;  %s471_s0 = smov [#allocation8]  }
   0xf   :  { %v346_v2 = vld [vmem:[#allocation5 + $0x40] sm:$0xff]  ;;  %v60_v3 = vpack.c.bf16 %v59_v1, %v59_v1  ;;  %82 = vmatpush.bf16.msra.mxu0 %v338_v0  ;;  %v345_v4 = vld [vmem:[#allocation5 + $0x38] sm:$0xff]  ;;  %v344_v5 = vld [vmem:[#allocation5 + $0x30] sm:$0xff]  ;;  %s256_s2 = sshll.u32 %s471_s0, 4  ;;  %s258_s30 = sshll.u32 %s507_s3, 4  ;;  %s257_s2 = int_to_ptr.vmem [resolvable:$true] %s256_s2  ;;  %s259_s30 = int_to_ptr.hbm [resolvable:$true] %s258_s30 }
  0x10   :  { %156 = vmatpush.bf16.msra.mxu1 %v346_v2  ;;  %v343_v6 = vld [vmem:[#allocation5 + $0x28] sm:$0xff]  ;;  %v342_v7 = vld [vmem:[#allocation5 + $0x20] sm:$0xff]  ;;  %v341_v8 = vld [vmem:[#allocation5 + $0x18] sm:$0xff] }
  0x11   :  { %v340_v9 = vld [vmem:[#allocation5 + $0x10] sm:$0xff]  ;;  %v339_v10 = vld [vmem:[#allocation5 + $0x8] sm:$0xff]  ;;  %v354_v11 = vld [vmem:[#allocation5 + $0x80] sm:$0xff] }
  0x12   :  { %273 = vmatmul.msk.bf16.vlgmr.msra.gmra.mxu0 %vm71_vm0, %v60_v3  ;;  %237 = vmatpush.bf16.msra.mxu2 %v354_v11  ;;  %v353_v12 = vld [vmem:[#allocation5 + $0x78] sm:$0xff]  ;;  %v352_v13 = vld [vmem:[#allocation5 + $0x70] sm:$0xff]  ;;  %v351_v14 = vld [vmem:[#allocation5 + $0x68] sm:$0xff] }
  0x13   :  { %v350_v15 = vld [vmem:[#allocation5 + $0x60] sm:$0xff]  ;;  %v349_v16 = vld [vmem:[#allocation5 + $0x58] sm:$0xff]  ;;  %v361_v17 = vld [vmem:[#allocation7] ss:$0 sm:$0xff] }
  0x14   :  { %157 = vmatpush.bf16.msra.mxu1 %v345_v4  ;;  %v348_v23 = vld [vmem:[#allocation5 + $0x50] sm:$0xff]  ;;  %v347_v24 = vld [vmem:[#allocation5 + $0x48] sm:$0xff] }
  0x15   :  { %v362_v25 = vld [vmem:[#allocation7 + $0x1] ss:$0 sm:$0xff]  ;;  %v363_v31 = vld [vmem:[#allocation7 + $0x2] ss:$0 sm:$0xff] }
  0x16   :  { %238 = vmatpush.bf16.msra.mxu2 %v353_v12 }
  0x18   :  { %158 = vmatpush.bf16.msra.mxu1 %v344_v5 }
  0x1a   :  { %239 = vmatpush.bf16.msra.mxu2 %v352_v13 }
  0x1c   :  { %159 = vmatpush.bf16.msra.mxu1 %v343_v6 }
  0x1e   :  { %240 = vmatpush.bf16.msra.mxu2 %v351_v14 }
  0x20   :  { %160 = vmatpush.bf16.msra.mxu1 %v342_v7 }
  0x22   :  { %241 = vmatpush.bf16.msra.mxu2 %v350_v15 }
  0x24   :  { %161 = vmatpush.bf16.msra.mxu1 %v341_v8 }
  0x26   :  { %242 = vmatpush.bf16.msra.mxu2 %v349_v16 }
  0x28   :  { %162 = vmatpush.bf16.msra.mxu1 %v340_v9 }
  0x2a   :  { %243 = vmatpush.bf16.msra.mxu2 %v348_v23 }
  0x2c   :  { %163 = vmatpush.bf16.msra.mxu1 %v339_v10 }
  0x2e   :  { %244 = vmatpush.bf16.msra.mxu2 %v347_v24 }
  0x8f   :  { %v84_v18 = vpop.f32.mrf.mxu0 }
  0x90   :  { %v85_v19 = vadd.f32 %v361_v17, %v84_v18 }
  0x92   :  { %v88_v20 = vmax.f32 %v85_v19, 0.0 }
  0x94   :  { %v89_v21 = vpack.c.bf16 %v88_v20, %v88_v20 }
  0x96   :  { %164 = vmatmul.bf16.vlgmr.msra.gmra.mxu1 %v89_v21 }
  0x97   :  { %v86_v22 = vpop.f32.mrf.mxu0 }
 0x113   :  { %v165_v26 = vpop.f32.mrf.mxu1 }
 0x114   :  { %v166_v27 = vadd.f32 %v362_v25, %v165_v26 }
 0x116   :  { %v169_v28 = vmax.f32 %v166_v27, 0.0 }
 0x118   :  { %v170_v29 = vpack.c.bf16 %v169_v28, %v169_v28 }
 0x11a   :  { %245 = vmatmul.bf16.vlgmr.msra.gmra.mxu2 %v170_v29 }
 0x11b   :  { %v167_v30 = vpop.f32.mrf.mxu1 }
 0x19d   :  { %v246_v32 = vpop.f32.mrf.mxu2 }
 0x19e   :  { %v247_v33 = vadd.f32 %v363_v31, %v246_v32 }
 0x1a0   :  { %250 = vst [vmem:[#allocation8] sm:$0xff] %v247_v33 }
 0x1a1   :  { %261 = dma.vmem_to_hbm [thread:$0]  %s257_s2, 128, %s259_s30, [#allocation4]  }
 0x1a5   :  { %v248_v34 = vpop.f32.mrf.mxu2 }
 0x1a6   :  { %464 = dma.done.wait [#allocation4], 128  }
 0x1a7   :  { %465 = vsyncadd [#allocation4], 4294967168 }
 0x1a8   :  { %266 = vsyncpa [#allocation3], 1 }
 0x1a9   :  { %267 = vsyncpa [#allocation6], 1 }
 0x1aa   :  { %268 = vsyncpa [#allocation4], 1 }

</bundles_post_ra>
